<compile_context>
chip_gen: v7x
topology: tpu7x:2x2x1
jax: 0.10.0
libtpu: 0.0.40
codegen_flags: <defaults>
</compile_context>

<pallas_src>
import functools
import math

import jax
import jax.numpy as jnp
from jax import lax
from jax.experimental import pallas as pl
from jax.experimental.pallas import tpu as pltpu

H_GRID = 32          # module default H
W_GRID = 64          # module default W
HID = 32             # hidden width of each of the u/v networks
TWO_W = 2 * W_GRID   # 128: fused lane width  [U | V] / [dU | dV]
TWO_H = 2 * HID      # 64 : fused hidden width

_INV_SQRT2 = 0.7071067811865476
_INV_SQRT_2PI = 0.3989422804014327


def _pinn_kernel(data_ref, grid_ref, w1t_ref, b1_ref, rhs_ref, b2_ref, s_ref,
                 du_ref, dv_ref, psum_ref=None, *, tb, calculate_pde):
    """One batch-tile of `tb` images (tb * 32 matmul rows).

    data_ref: (tb, 2, 32, 64)  raw input block (channels 0 and 1)
    grid_ref: (2, 32, 64)      [grid_x ; grid_y] constant
    w1t_ref:  (128, 64)        block_diag(w1u.T, w1v.T)
    b1_ref:   (1, 64)          [b1u | b1v]
    rhs_ref:  (64, 128)  fwd-only: block_diag(w2u.T, w2v.T)
              (128, 256) pde    : block_diag(W2T_bd, W1_bd)  (out+grad fused)
    b2_ref:   (1, 128)         [b2u | b2v]
    s_ref:    (1, 64)          column sums of W2  [su | sv]
    du_ref:   (tb, 32, 64)     delta_U block
    dv_ref:   (tb, 32, 64)     delta_V block
    psum_ref: (1, 8, 128)      per-tile sum of |du_dx + dv_dy| (PDE mode only)
    """
    rows = tb * H_GRID

    d0 = data_ref[:, 0].astype(jnp.float32)            # (tb, 32, 64)
    d1 = data_ref[:, 1].astype(jnp.float32)
    gx = grid_ref[0]                                    # (32, 64)
    gy = grid_ref[1]

    xu = (d0 * gx).reshape(rows, W_GRID)                # U = data0 * grid_x
    xv = (d1 * gy).reshape(rows, W_GRID)                # V = data1 * grid_y
    x = jnp.concatenate([xu, xv], axis=-1)              # (rows, 128)  [U | V]

    # h = X @ W1^T + b1 ; exact erf GELU.
    h = jnp.dot(x, w1t_ref[...], preferred_element_type=jnp.float32) + b1_ref[...]
    cdf = 0.5 * (1.0 + lax.erf(h * _INV_SQRT2))          # Phi(h)
    g = h * cdf                                          # gelu(h), (rows, 64)

    if calculate_pde:
        # gelu'(h) = Phi(h) + h * phi(h)
        gp = cdf + h * jnp.exp(-0.5 * h * h) * _INV_SQRT_2PI
        t = gp * s_ref[...]                              # (rows, 64)
        # Fused MXU call: [g | t] @ [[W2T_bd, 0], [0, W1_bd]] -> [out | grad]
        lhs = jnp.concatenate([g, t], axis=-1)           # (rows, 128)
        res = jnp.dot(lhs, rhs_ref[...],
                      preferred_element_type=jnp.float32)  # (rows, 256)
        out = res[:, :TWO_W] + b2_ref[...]               # [dU | dV]
        grad = res[:, TWO_W:]                            # d(sum net)/d input
        du_dx = d0.reshape(rows, W_GRID) * (1.0 + grad[:, :W_GRID])
        dv_dy = d1.reshape(rows, W_GRID) * (1.0 + grad[:, W_GRID:])
        psum = jnp.sum(jnp.abs(du_dx + dv_dy))
        psum_ref[...] = jnp.full(psum_ref.shape, psum, jnp.float32)
    else:
        out = jnp.dot(g, rhs_ref[...],
                      preferred_element_type=jnp.float32) + b2_ref[...]

    du_ref[...] = out[:, :W_GRID].reshape(tb, H_GRID, W_GRID).astype(du_ref.dtype)
    dv_ref[...] = out[:, W_GRID:].reshape(tb, H_GRID, W_GRID).astype(dv_ref.dtype)


def _block_diag(a, b):
    za = jnp.zeros((a.shape[0], b.shape[1]), jnp.float32)
    zb = jnp.zeros((b.shape[0], a.shape[1]), jnp.float32)
    return jnp.concatenate(
        [jnp.concatenate([a, za], axis=1),
         jnp.concatenate([zb, b], axis=1)], axis=0)


def _pick_batch_tile(batch):
    """>=2 grid steps whenever batch >= 2 (both TensorCores on v7x); rows per
    tile capped at 1024 (tb <= 32) for long HBM bursts on v5e/v6e."""
    if batch <= 1:
        return 1
    cap = min(batch // 2, 1024 // H_GRID)
    for tb in range(cap, 0, -1):
        if batch % tb == 0:
            return tb
    return 1


def init_params(key):
    """Deterministic synthetic parameters (shapes match the nn.Linear layers)."""
    ks = jax.random.split(key, 8)

    def lin(kw, kb, out_f, in_f):
        bound = 1.0 / math.sqrt(in_f)
        w = jax.random.uniform(kw, (out_f, in_f), jnp.float32, -bound, bound)
        b = jax.random.uniform(kb, (out_f,), jnp.float32, -bound, bound)
        return w, b

    w1u, b1u = lin(ks[0], ks[1], HID, W_GRID)     # Linear(64, 32)
    w2u, b2u = lin(ks[2], ks[3], W_GRID, HID)     # Linear(32, 64)
    w1v, b1v = lin(ks[4], ks[5], HID, W_GRID)
    w2v, b2v = lin(ks[6], ks[7], W_GRID, HID)
    return dict(w1u=w1u, b1u=b1u, w2u=w2u, b2u=b2u,
                w1v=w1v, b1v=b1v, w2v=w2v, b2v=b2v)


def separable_pinn_forward(data, params, calculate_pde=True):
    B, C, H, W = data.shape
    assert C >= 2 and H == H_GRID and W == W_GRID
    tb = _pick_batch_tile(B)
    n_tiles = B // tb

    # Constant PDE grid (torch.linspace(0, W, 64) / linspace(0, H, 32)); 16 KiB.
    xs = jnp.linspace(0.0, float(W_GRID), W_GRID, dtype=jnp.float32)
    ys = jnp.linspace(0.0, float(H_GRID), H_GRID, dtype=jnp.float32)
    grid_const = jnp.stack(
        [jnp.broadcast_to(xs[None, :], (H_GRID, W_GRID)),       # grid_x
         jnp.broadcast_to(ys[:, None], (H_GRID, W_GRID))],      # grid_y
        axis=0)                                                  # (2, H, W)

    # Fused block-diagonal weights (tiny; built once per call).
    w1u, w1v = params["w1u"], params["w1v"]        # (32, 64)
    w2u, w2v = params["w2u"], params["w2v"]        # (64, 32)
    w1t_bd = _block_diag(w1u.T, w1v.T)             # (128, 64)
    w2t_bd = _block_diag(w2u.T, w2v.T)             # (64, 128)
    b1_bd = jnp.concatenate([params["b1u"], params["b1v"]]).reshape(1, TWO_H)
    b2_bd = jnp.concatenate([params["b2u"], params["b2v"]]).reshape(1, TWO_W)
    s_bd = jnp.concatenate([jnp.sum(w2u, axis=0),
                            jnp.sum(w2v, axis=0)]).reshape(1, TWO_H)

    if calculate_pde:
        # Fused out+grad RHS: [[W2T_bd, 0], [0, W1_bd]]  -> (128, 256)
        rhs = _block_diag(w2t_bd, _block_diag(w1u, w1v))
    else:
        rhs = w2t_bd                                # (64, 128)

    def const2(shape):
        return pl.BlockSpec(shape, lambda i: (0, 0))

    in_specs = [
        pl.BlockSpec((tb, 2, H_GRID, W_GRID), lambda i: (i, 0, 0, 0)),   # data
        pl.BlockSpec((2, H_GRID, W_GRID), lambda i: (0, 0, 0)),          # grid
        const2((TWO_W, TWO_H)),      # w1t_bd
        const2((1, TWO_H)),          # b1_bd
        const2(rhs.shape),           # rhs (fwd-only or fused out+grad)
        const2((1, TWO_W)),          # b2_bd
        const2((1, TWO_H)),          # s_bd
    ]
    out_specs = [
        pl.BlockSpec((tb, H_GRID, W_GRID), lambda i: (i, 0, 0)),         # delta_U
        pl.BlockSpec((tb, H_GRID, W_GRID), lambda i: (i, 0, 0)),         # delta_V
    ]
    out_shape = [
        jax.ShapeDtypeStruct((B, H_GRID, W_GRID), jnp.float32),
        jax.ShapeDtypeStruct((B, H_GRID, W_GRID), jnp.float32),
    ]
    if calculate_pde:
        out_specs.append(pl.BlockSpec((1, 8, TWO_W), lambda i: (i, 0, 0)))
        out_shape.append(jax.ShapeDtypeStruct((n_tiles, 8, TWO_W), jnp.float32))

    outs = pl.pallas_call(
        functools.partial(_pinn_kernel, tb=tb, calculate_pde=calculate_pde),
        grid=(n_tiles,),
        in_specs=in_specs,
        out_specs=out_specs,
        out_shape=out_shape,
        compiler_params=pltpu.CompilerParams(
            dimension_semantics=("parallel",)),
    )(data, grid_const, w1t_bd, b1_bd, rhs, b2_bd, s_bd)

    # (B, H, W) -> (B, 1, H, W): metadata-only reshape, no HBM pass.
    delta_U = outs[0].reshape(B, 1, H_GRID, W_GRID)
    delta_V = outs[1].reshape(B, 1, H_GRID, W_GRID)
    if calculate_pde:
        # F.l1_loss(pde, zeros), reduction='mean' over (B, 1, H, W)
        pde_loss = jnp.sum(outs[2][:, 0, 0]) / (B * 1 * H_GRID * W_GRID)
        return delta_U, delta_V, pde_loss
    return delta_U, delta_V


def _reference(data, params):
    """Pure-JAX reference mirroring the PyTorch module (PDE term via jax.grad)."""
    B = data.shape[0]
    xs = jnp.linspace(0.0, float(W_GRID), W_GRID, dtype=jnp.float32)
    ys = jnp.linspace(0.0, float(H_GRID), H_GRID, dtype=jnp.float32)
    gy2, gx2 = jnp.meshgrid(ys, xs, indexing="ij")                   # (H, W)
    gx = jnp.broadcast_to(gx2[None, None], (B, 1, H_GRID, W_GRID))
    gy = jnp.broadcast_to(gy2[None, None], (B, 1, H_GRID, W_GRID))
    d0 = data[:, 0:1]
    d1 = data[:, 1:2]

    def net(x, w1, b1, w2, b2):
        h = jnp.einsum("bchw,mw->bchm", x, w1) + b1
        g = jax.nn.gelu(h, approximate=False)
        return jnp.einsum("bchm,om->bcho", g, w2) + b2

    delta_U = net(d0 * gx, params["w1u"], params["b1u"], params["w2u"], params["b2u"])
    delta_V = net(d1 * gy, params["w1v"], params["b1v"], params["w2v"], params["b2v"])

    def fu(gxv):
        U = d0 * gxv
        return jnp.sum(U + net(U, params["w1u"], params["b1u"],
                               params["w2u"], params["b2u"]))

    def fv(gyv):
        V = d1 * gyv
        return jnp.sum(V + net(V, params["w1v"], params["b1v"],
                               params["w2v"], params["b2v"]))

    du_dx = jax.grad(fu)(gx)
    dv_dy = jax.grad(fv)(gy)
    pde_loss = jnp.mean(jnp.abs(du_dx + dv_dy))
    return delta_U, delta_V, pde_loss


if __name__ == "__main__":
    key = jax.random.PRNGKey(0)
    k_data, k_params = jax.random.split(key)
    params = init_params(k_params)
    data = jax.random.normal(k_data, (2, 2, H_GRID, W_GRID), dtype=jnp.float32)

    fwd = jax.jit(separable_pinn_forward, static_argnames=("calculate_pde",))

    delta_U, delta_V, pde_loss = fwd(data, params, calculate_pde=True)
    jax.block_until_ready((delta_U, delta_V, pde_loss))
    assert delta_U.shape == (2, 1, H_GRID, W_GRID)
    assert delta_V.shape == (2, 1, H_GRID, W_GRID)
    assert pde_loss.shape == ()

    dU_np, dV_np = fwd(data, params, calculate_pde=False)
    jax.block_until_ready((dU_np, dV_np))
    assert dU_np.shape == (2, 1, H_GRID, W_GRID)

    # Correctness vs pure-JAX reference (autodiff for the PDE derivative).
    rU, rV, rpde = _reference(data, params)
    assert jnp.allclose(delta_U, rU, rtol=1e-3, atol=1e-3)
    assert jnp.allclose(delta_V, rV, rtol=1e-3, atol=1e-3)
    assert jnp.allclose(pde_loss, rpde, rtol=1e-3, atol=1e-3)
    assert jnp.allclose(dU_np, rU, rtol=1e-3, atol=1e-3)
    assert jnp.allclose(dV_np, rV, rtol=1e-3, atol=1e-3)

    print("KERNEL_OK")
</pallas_src>

<mosaic_0001>
module attributes {stable_mosaic.version = 11 : i64} {
  func.func @_pinn_kernel(%arg0: i32, %arg1: memref<1x2x32x64xf32, #tpu.memory_space<vmem>>, %arg2: memref<2x32x64xf32, #tpu.memory_space<vmem>>, %arg3: memref<128x64xf32, #tpu.memory_space<vmem>>, %arg4: memref<1x64xf32, #tpu.memory_space<vmem>>, %arg5: memref<128x256xf32, #tpu.memory_space<vmem>>, %arg6: memref<1x128xf32, #tpu.memory_space<vmem>>, %arg7: memref<1x64xf32, #tpu.memory_space<vmem>>, %arg8: memref<1x32x64xf32, #tpu.memory_space<vmem>>, %arg9: memref<1x32x64xf32, #tpu.memory_space<vmem>>, %arg10: memref<1x8x128xf32, #tpu.memory_space<vmem>>) attributes {dimension_semantics = [#tpu.dimension_semantics<parallel>], iteration_bounds = array<i64: 2>, scalar_prefetch = 0 : i64, scratch_operands = 0 : i64, tpu.core_type = #tpu.core_type<tc>, window_params = [{transform_indices = @transform_0, window_bounds = array<i64: 1, 2, 32, 64>}, {pipeline_mode = #tpu.pipeline_mode<synchronous>, transform_indices = @transform_1, window_bounds = array<i64: 2, 32, 64>}, {pipeline_mode = #tpu.pipeline_mode<synchronous>, transform_indices = @transform_2, window_bounds = array<i64: 128, 64>}, {pipeline_mode = #tpu.pipeline_mode<synchronous>, transform_indices = @transform_3, window_bounds = array<i64: 1, 64>}, {pipeline_mode = #tpu.pipeline_mode<synchronous>, transform_indices = @transform_4, window_bounds = array<i64: 128, 256>}, {pipeline_mode = #tpu.pipeline_mode<synchronous>, transform_indices = @transform_5, window_bounds = array<i64: 1, 128>}, {pipeline_mode = #tpu.pipeline_mode<synchronous>, transform_indices = @transform_6, window_bounds = array<i64: 1, 64>}, {transform_indices = @transform_7, window_bounds = array<i64: 1, 32, 64>}, {transform_indices = @transform_8, window_bounds = array<i64: 1, 32, 64>}, {transform_indices = @transform_9, window_bounds = array<i64: 1, 8, 128>}]} {
    %c0 = arith.constant 0 : index
    %c0_0 = arith.constant 0 : index
    %c0_1 = arith.constant 0 : index
    %c0_2 = arith.constant 0 : index
    %0 = vector.load %arg1[%c0, %c0_0, %c0_1, %c0_2] : memref<1x2x32x64xf32, #tpu.memory_space<vmem>>, vector<1x1x32x64xf32>
    %1 = vector.shape_cast %0 : vector<1x1x32x64xf32> to vector<1x32x64xf32>
    %c0_3 = arith.constant 0 : index
    %c1 = arith.constant 1 : index
    %c0_4 = arith.constant 0 : index
    %c0_5 = arith.constant 0 : index
    %2 = vector.load %arg1[%c0_3, %c1, %c0_4, %c0_5] : memref<1x2x32x64xf32, #tpu.memory_space<vmem>>, vector<1x1x32x64xf32>
    %3 = vector.shape_cast %2 : vector<1x1x32x64xf32> to vector<1x32x64xf32>
    %c0_6 = arith.constant 0 : index
    %c0_7 = arith.constant 0 : index
    %c0_8 = arith.constant 0 : index
    %4 = vector.load %arg2[%c0_6, %c0_7, %c0_8] : memref<2x32x64xf32, #tpu.memory_space<vmem>>, vector<1x32x64xf32>
    %5 = vector.shape_cast %4 : vector<1x32x64xf32> to vector<32x64xf32>
    %c1_9 = arith.constant 1 : index
    %c0_10 = arith.constant 0 : index
    %c0_11 = arith.constant 0 : index
    %6 = vector.load %arg2[%c1_9, %c0_10, %c0_11] : memref<2x32x64xf32, #tpu.memory_space<vmem>>, vector<1x32x64xf32>
    %7 = vector.shape_cast %6 : vector<1x32x64xf32> to vector<32x64xf32>
    %8 = vector.shape_cast %5 : vector<32x64xf32> to vector<1x32x64xf32>
    %9 = arith.mulf %1, %8 : vector<1x32x64xf32>
    %10 = vector.shape_cast %9 : vector<1x32x64xf32> to vector<32x64xf32>
    %11 = vector.shape_cast %7 : vector<32x64xf32> to vector<1x32x64xf32>
    %12 = arith.mulf %3, %11 : vector<1x32x64xf32>
    %13 = vector.shape_cast %12 : vector<1x32x64xf32> to vector<32x64xf32>
    %14 = tpu.concatenate %10, %13 in 1 : vector<32x64xf32>, vector<32x64xf32> -> vector<32x128xf32>
    %c0_12 = arith.constant 0 : index
    %c0_13 = arith.constant 0 : index
    %15 = vector.load %arg3[%c0_12, %c0_13] : memref<128x64xf32, #tpu.memory_space<vmem>>, vector<128x64xf32>
    %cst = arith.constant dense<0.000000e+00> : vector<32x64xf32>
    %16 = tpu.matmul %14, %15, %cst {dimension_numbers = #tpu.dot_dimension_numbers<[1], [0], [0], [1], [0, 0, 1, 1], [], []>} : vector<32x128xf32>, vector<128x64xf32>, vector<32x64xf32> -> vector<32x64xf32>
    %c0_14 = arith.constant 0 : index
    %c0_15 = arith.constant 0 : index
    %17 = vector.load %arg4[%c0_14, %c0_15] : memref<1x64xf32, #tpu.memory_space<vmem>>, vector<1x64xf32>
    %18 = vector.broadcast %17 : vector<1x64xf32> to vector<32x64xf32>
    %19 = arith.addf %16, %18 : vector<32x64xf32>
    %cst_16 = arith.constant 0.707106769 : f32
    %20 = vector.broadcast %cst_16 : f32 to vector<32x64xf32>
    %21 = arith.mulf %19, %20 : vector<32x64xf32>
    %22 = math.erf %21 : vector<32x64xf32>
    %cst_17 = arith.constant 1.000000e+00 : f32
    %23 = vector.broadcast %cst_17 : f32 to vector<32x64xf32>
    %24 = arith.addf %23, %22 : vector<32x64xf32>
    %cst_18 = arith.constant 5.000000e-01 : f32
    %25 = vector.broadcast %cst_18 : f32 to vector<32x64xf32>
    %26 = arith.mulf %25, %24 : vector<32x64xf32>
    %27 = arith.mulf %19, %26 : vector<32x64xf32>
    %cst_19 = arith.constant -5.000000e-01 : f32
    %28 = vector.broadcast %cst_19 : f32 to vector<32x64xf32>
    %29 = arith.mulf %28, %19 : vector<32x64xf32>
    %30 = arith.mulf %29, %19 : vector<32x64xf32>
    %31 = math.exp %30 : vector<32x64xf32>
    %32 = arith.mulf %19, %31 : vector<32x64xf32>
    %cst_20 = arith.constant 0.398942292 : f32
    %33 = vector.broadcast %cst_20 : f32 to vector<32x64xf32>
    %34 = arith.mulf %32, %33 : vector<32x64xf32>
    %35 = arith.addf %26, %34 : vector<32x64xf32>
    %c0_21 = arith.constant 0 : index
    %c0_22 = arith.constant 0 : index
    %36 = vector.load %arg7[%c0_21, %c0_22] : memref<1x64xf32, #tpu.memory_space<vmem>>, vector<1x64xf32>
    %37 = vector.broadcast %36 : vector<1x64xf32> to vector<32x64xf32>
    %38 = arith.mulf %35, %37 : vector<32x64xf32>
    %39 = tpu.concatenate %27, %38 in 1 : vector<32x64xf32>, vector<32x64xf32> -> vector<32x128xf32>
    %c0_23 = arith.constant 0 : index
    %c0_24 = arith.constant 0 : index
    %40 = vector.load %arg5[%c0_23, %c0_24] : memref<128x256xf32, #tpu.memory_space<vmem>>, vector<128x256xf32>
    %cst_25 = arith.constant dense<0.000000e+00> : vector<32x256xf32>
    %41 = tpu.matmul %39, %40, %cst_25 {dimension_numbers = #tpu.dot_dimension_numbers<[1], [0], [0], [1], [0, 0, 1, 1], [], []>} : vector<32x128xf32>, vector<128x256xf32>, vector<32x256xf32> -> vector<32x256xf32>
    %42 = vector.extract_strided_slice %41 {offsets = [0, 0], sizes = [32, 128], strides = [1, 1]} : vector<32x256xf32> to vector<32x128xf32>
    %c0_26 = arith.constant 0 : index
    %c0_27 = arith.constant 0 : index
    %43 = vector.load %arg6[%c0_26, %c0_27] : memref<1x128xf32, #tpu.memory_space<vmem>>, vector<1x128xf32>
    %44 = vector.broadcast %43 : vector<1x128xf32> to vector<32x128xf32>
    %45 = arith.addf %42, %44 : vector<32x128xf32>
    %46 = vector.extract_strided_slice %41 {offsets = [0, 128], sizes = [32, 128], strides = [1, 1]} : vector<32x256xf32> to vector<32x128xf32>
    %47 = vector.shape_cast %1 : vector<1x32x64xf32> to vector<32x64xf32>
    %48 = vector.extract_strided_slice %46 {offsets = [0, 0], sizes = [32, 64], strides = [1, 1]} : vector<32x128xf32> to vector<32x64xf32>
    %cst_28 = arith.constant 1.000000e+00 : f32
    %49 = vector.broadcast %cst_28 : f32 to vector<32x64xf32>
    %50 = arith.addf %49, %48 : vector<32x64xf32>
    %51 = arith.mulf %47, %50 : vector<32x64xf32>
    %52 = vector.shape_cast %3 : vector<1x32x64xf32> to vector<32x64xf32>
    %53 = vector.extract_strided_slice %46 {offsets = [0, 64], sizes = [32, 64], strides = [1, 1]} : vector<32x128xf32> to vector<32x64xf32>
    %cst_29 = arith.constant 1.000000e+00 : f32
    %54 = vector.broadcast %cst_29 : f32 to vector<32x64xf32>
    %55 = arith.addf %54, %53 : vector<32x64xf32>
    %56 = arith.mulf %52, %55 : vector<32x64xf32>
    %57 = arith.addf %51, %56 : vector<32x64xf32>
    %58 = math.absf %57 : vector<32x64xf32>
    %59 = vector.shape_cast %58 : vector<32x64xf32> to vector<1x32x64xf32>
    %cst_30 = arith.constant dense<0.000000e+00> : vector<1xf32>
    %60 = vector.multi_reduction <add>, %59, %cst_30 [1, 2] : vector<1x32x64xf32> to vector<1xf32>
    %61 = vector.shape_cast %60 : vector<1xf32> to vector<1x1x1xf32>
    %62 = vector.extract %61[0, 0, 0] : f32 from vector<1x1x1xf32>
    %63 = vector.broadcast %62 : f32 to vector<1x8x128xf32>
    %c0_31 = arith.constant 0 : index
    %c0_32 = arith.constant 0 : index
    %c0_33 = arith.constant 0 : index
    %64 = vector.load %arg10[%c0_31, %c0_32, %c0_33] : memref<1x8x128xf32, #tpu.memory_space<vmem>>, vector<1x8x128xf32>
    tpu.vector_store %arg10[%c0_31, %c0_32, %c0_33], %63 {strides = array<i32>} : memref<1x8x128xf32, #tpu.memory_space<vmem>>, vector<1x8x128xf32>,
    %65 = vector.extract_strided_slice %45 {offsets = [0, 0], sizes = [32, 64], strides = [1, 1]} : vector<32x128xf32> to vector<32x64xf32>
    %66 = vector.shape_cast %65 : vector<32x64xf32> to vector<1x32x64xf32>
    %c0_34 = arith.constant 0 : index
    %c0_35 = arith.constant 0 : index
    %c0_36 = arith.constant 0 : index
    %67 = vector.load %arg8[%c0_34, %c0_35, %c0_36] : memref<1x32x64xf32, #tpu.memory_space<vmem>>, vector<1x32x64xf32>
    tpu.vector_store %arg8[%c0_34, %c0_35, %c0_36], %66 {strides = array<i32>} : memref<1x32x64xf32, #tpu.memory_space<vmem>>, vector<1x32x64xf32>,
    %68 = vector.extract_strided_slice %45 {offsets = [0, 64], sizes = [32, 64], strides = [1, 1]} : vector<32x128xf32> to vector<32x64xf32>
    %69 = vector.shape_cast %68 : vector<32x64xf32> to vector<1x32x64xf32>
    %c0_37 = arith.constant 0 : index
    %c0_38 = arith.constant 0 : index
    %c0_39 = arith.constant 0 : index
    %70 = vector.load %arg9[%c0_37, %c0_38, %c0_39] : memref<1x32x64xf32, #tpu.memory_space<vmem>>, vector<1x32x64xf32>
    tpu.vector_store %arg9[%c0_37, %c0_38, %c0_39], %69 {strides = array<i32>} : memref<1x32x64xf32, #tpu.memory_space<vmem>>, vector<1x32x64xf32>,
    return
  }
  func.func @transform_0(%arg0: i32) -> (i32, i32, i32, i32) {
    %c0_i32 = arith.constant 0 : i32
    %c0_i32_0 = arith.constant 0 : i32
    %c0_i32_1 = arith.constant 0 : i32
    %c0_i32_2 = arith.constant 0 : i32
    return %arg0, %c0_i32, %c0_i32_0, %c0_i32_1 : i32, i32, i32, i32
  }
  func.func @transform_1(%arg0: i32) -> (i32, i32, i32) {
    %c0_i32 = arith.constant 0 : i32
    %c0_i32_0 = arith.constant 0 : i32
    %c0_i32_1 = arith.constant 0 : i32
    %c0_i32_2 = arith.constant 0 : i32
    return %c0_i32, %c0_i32_0, %c0_i32_1 : i32, i32, i32
  }
  func.func @transform_2(%arg0: i32) -> (i32, i32) {
    %c0_i32 = arith.constant 0 : i32
    %c0_i32_0 = arith.constant 0 : i32
    %c0_i32_1 = arith.constant 0 : i32
    return %c0_i32, %c0_i32_0 : i32, i32
  }
  func.func @transform_3(%arg0: i32) -> (i32, i32) {
    %c0_i32 = arith.constant 0 : i32
    %c0_i32_0 = arith.constant 0 : i32
    %c0_i32_1 = arith.constant 0 : i32
    return %c0_i32, %c0_i32_0 : i32, i32
  }
  func.func @transform_4(%arg0: i32) -> (i32, i32) {
    %c0_i32 = arith.constant 0 : i32
    %c0_i32_0 = arith.constant 0 : i32
    %c0_i32_1 = arith.constant 0 : i32
    return %c0_i32, %c0_i32_0 : i32, i32
  }
  func.func @transform_5(%arg0: i32) -> (i32, i32) {
    %c0_i32 = arith.constant 0 : i32
    %c0_i32_0 = arith.constant 0 : i32
    %c0_i32_1 = arith.constant 0 : i32
    return %c0_i32, %c0_i32_0 : i32, i32
  }
  func.func @transform_6(%arg0: i32) -> (i32, i32) {
    %c0_i32 = arith.constant 0 : i32
    %c0_i32_0 = arith.constant 0 : i32
    %c0_i32_1 = arith.constant 0 : i32
    return %c0_i32, %c0_i32_0 : i32, i32
  }
  func.func @transform_7(%arg0: i32) -> (i32, i32, i32) {
    %c0_i32 = arith.constant 0 : i32
    %c0_i32_0 = arith.constant 0 : i32
    %c0_i32_1 = arith.constant 0 : i32
    return %arg0, %c0_i32, %c0_i32_0 : i32, i32, i32
  }
  func.func @transform_8(%arg0: i32) -> (i32, i32, i32) {
    %c0_i32 = arith.constant 0 : i32
    %c0_i32_0 = arith.constant 0 : i32
    %c0_i32_1 = arith.constant 0 : i32
    return %arg0, %c0_i32, %c0_i32_0 : i32, i32, i32
  }
  func.func @transform_9(%arg0: i32) -> (i32, i32, i32) {
    %c0_i32 = arith.constant 0 : i32
    %c0_i32_0 = arith.constant 0 : i32
    %c0_i32_1 = arith.constant 0 : i32
    return %arg0, %c0_i32, %c0_i32_0 : i32, i32, i32
  }
}

</mosaic_0001>

<bundles_post_ra>
// kernel: separable_pinn_forward.1
= control target key start
LH: loop header
LB: loop body
LE: loop exit
PB: predicated region body
PF: predicated region fallthrough
CT: control target
= control target key end

     0   :  { %s1755_s0 = inlined_call_operand.vmem [shape: f32[2,2,32,64], index: 0, kind: input, shape index: {}]   ;;  %s1756_s1 = inlined_call_operand.vmem [shape: f32[2,32,64], index: 1, kind: input, shape index: {}]   ;;  %s1757_s2 = inlined_call_operand.vmem [shape: f32[128,64], index: 2, kind: input, shape index: {}]   ;;  %s1758_s3 = inlined_call_operand.vmem [shape: f32[1,64], index: 3, kind: input, shape index: {}]   ;;  %s1759_s4 = inlined_call_operand.vmem [shape: f32[128,256], index: 4, kind: input, shape index: {}]   ;;  %s1760_s5 = inlined_call_operand.vmem [shape: f32[1,128], index: 5, kind: input, shape index: {}]   ;;  %s1761_s6 = inlined_call_operand.vmem [shape: f32[1,64], index: 6, kind: input, shape index: {}]   ;;  %s1762_s7 = inlined_call_operand.hbm [shape: f32[2,32,64], index: 7, kind: output, shape index: {0}]   ;;  %s1763_s8 = inlined_call_operand.hbm [shape: f32[2,32,64], index: 8, kind: output, shape index: {1}]   ;;  %s1764_s9 = inlined_call_operand.vmem [shape: f32[2,8,128], index: 9, kind: output, shape index: {2}]  }
   0x1   :  { %1766 = sst [smem:[#allocation9_spill]] %s1755_s0 }
   0x2   :  { %1767 = sst [smem:[#allocation10_spill]] %s1756_s1 }
   0x3   :  { %1768 = sst [smem:[#allocation11_spill]] %s1757_s2 }
   0x4   :  { %1769 = sst [smem:[#allocation12_spill]] %s1758_s3 }
   0x5   :  { %15 = vsyncpa [#allocation3], 0 }
   0x6   :  { %17 = vsyncpa [#allocation3 + $0x1], 0 }
   0x7   :  { %18 = vsyncpa [#allocation5], 0 }
   0x8   :  { %20 = vsyncpa [#allocation5 + $0x1], 0  ;;  %s1337_s30 = smov 0   ;;  %s1339_s10 = smov 0  }
   0x9   :  { %s1341_s11 = smov 0   ;;  %s1343_s12 = smov 0  }
   0xa LB: > { %s1358_s13 = sadd.s32 4294967295, %s1279_s12   ;;  %s956_s14 = sadd.s32 4294967294, %s1279_s12   ;;  %s1279_s12 = sphi %s1343_s12, %s1783_s12   ;;  %s1275_s11 = sphi %s1341_s11, %s1782_s11   ;;  %s1271_s10 = sphi %s1339_s10, %s1781_s10   ;;  %s1267_s30 = sphi %s1337_s30, %s1780_s30  }
   0xb   : > { %s1362_s15 = sadd.s32 1, %s1279_s12   ;;  %s185_s16 = sadd.s32 1, %s1275_s11 }
   0xc   : > { %s182_s17 = ssub.s32 %s1279_s12, %s1362_s15  ;;  %p195_p0 = scmp.ne.s32.totalorder %s1275_s11, %s1271_s10 }
   0xd   : > { %p183_p1 = scmp.eq.s32.totalorder %s182_s17, 0  ;;  %p196_p2 = scmp.eq.s32.totalorder %s1358_s13, 1 }
   0xe   : > { %p201_p3 = scmp.ne.s32.totalorder %s1271_s10, %s1267_s30  ;;  %p202_p4 = scmp.eq.s32.totalorder %s956_s14, 1 }
   0xf   : > { %s1373_s18 = scalar_select %p183_p1, %s1275_s11, %s185_s16  }
  0x10   : > { %p1375_p5 = por %p196_p2, %p195_p0  ;;  %p1379_p6 = por %p202_p4, %p201_p3 }
  0x11   : > { %1770 = sst [smem:[#allocation8_spill]] %s1373_s18  ;;  %p959_p7 = scmp.ge.s32.totalorder %s1279_s12, 1 }
  0x12   : > { %p298_p8 = scmp.lt.s32.totalorder %s1279_s12, 3 }
  0x14   : > { %p299_p9 = pnand %p959_p7, %p298_p8 }
  0x15   : > { %p343_p10 = scmp.lt.s32.totalorder (!%p299_p9), %s1358_s13, 1  ;;  %s1773_s2 = sld [smem:[#allocation11_spill]] (!%p299_p9)  ;;  %vm394_vm0 = vcmask (!%p299_p9), 523264   ;;  %v587_v60 = vld [vmem:[%s1759_s4 + $0x8] sm:$0xff] (!%p299_p9)  ;;  %v589_v61 = vld [vmem:[%s1759_s4 + $0x18] sm:$0xff] (!%p299_p9)  ;;  %v586_v62 = vld [vmem:[%s1759_s4] sm:$0xff] (!%p299_p9) }
  0x16   : > { %302 = sbr.rel (%p299_p9) target bundleno = 1070 (0x42e), region = 48  ;;  %s1774_s1 = sld [smem:[#allocation10_spill]] (!%p299_p9)  ;;  %v1077_v63 = vpack.c.bf16 (!%p299_p9), %v589_v61, %v587_v60 }
  0x17   : > { %s1775_s0 = sld [smem:[#allocation9_spill]] (!%p299_p9)  ;;  %s1281_s27 = smov (!%p299_p9), 64  }
  0x18   : > { %1078 = vmatprep.subr.bf16.mxu1 (!%p299_p9), %v1077_v63  ;;  %s1776_s3 = sld [smem:[#allocation12_spill]] (!%p299_p9)  ;;  %s1616_s21 = sand.u32 (!%p299_p9), 1, %s1271_s10  }
  0x19   : > { %s1765_s14 = sshll.u32 (!%p299_p9), %s1358_s13, 9  ;;  %s1283_s24 = smov (!%p299_p9), [#allocation2]  }
  0x1a   : > { %s1671_s17 = scalar_lea.hbm (!%p299_p9), %s1762_s7, %s1765_s14 }
  0x1b   : > { %v399_v0 = vld [vmem:[%s1773_s2] sm:$0xff] (!%p299_p9)  ;;  %v400_v1 = vld [vmem:[%s1773_s2 + $0x8] sm:$0xff] (!%p299_p9)  ;;  %v401_v3 = vld [vmem:[%s1773_s2 + $0x10] sm:$0xff] (!%p299_p9) }
  0x1c   : > { %v1045_v2 = vpack.c.bf16 (!%p299_p9), %v400_v1, %v399_v0  ;;  %v402_v4 = vld [vmem:[%s1773_s2 + $0x18] sm:$0xff] (!%p299_p9)  ;;  %v403_v6 = vld [vmem:[%s1773_s2 + $0x20] sm:$0xff] (!%p299_p9)  ;;  %v404_v7 = vld [vmem:[%s1773_s2 + $0x28] sm:$0xff] (!%p299_p9) }
  0x1d   : > { %s1393_s25 = scalar_select %p343_p10, %s1358_s13, 1  ;;  %v1049_v5 = vpack.c.bf16 %v402_v4, %v401_v3  ;;  %v969_v8 = vld [vmem:[%s1774_s1 + $0x20] sm:$0xff]  ;;  %v970_v9 = vld [vmem:[%s1774_s1 + $0x28] sm:$0xff]  ;;  %v971_v10 = vld [vmem:[%s1774_s1 + $0x30] sm:$0xff]  ;;  %v1053_v15 = vpack.c.bf16 %v404_v7, %v403_v6 }
  0x1e   : > { %1046 = vmatprep.subr.bf16.mxu0 %v1045_v2  ;;  %v972_v11 = vld [vmem:[%s1774_s1 + $0x38] sm:$0xff]  ;;  %v405_v20 = vld [vmem:[%s1773_s2 + $0x30] sm:$0xff]  ;;  %v407_v26 = vld [vmem:[%s1773_s2 + $0x40] sm:$0xff] }
  0x1f   : > { %s984_s22 = sshll.u32 %s1393_s25, 6  ;;  %1048 = vmatpush3.bf16.msra.mxu0 %v1045_v2  ;;  %v406_v21 = vld [vmem:[%s1773_s2 + $0x38] sm:$0xff]  ;;  %v408_v27 = vld [vmem:[%s1773_s2 + $0x48] sm:$0xff]  ;;  %v409_v29 = vld [vmem:[%s1773_s2 + $0x50] sm:$0xff] }
  0x20   : > { %s1420_s18 = scalar_lea.vmem %s1775_s0, %s984_s22  ;;  %1050 = vmatprep.subr.bf16.mxu0 %v1049_v5  ;;  %v1057_v24 = vpack.c.bf16 %v406_v21, %v405_v20  ;;  %v1061_v28 = vpack.c.bf16 %v408_v27, %v407_v26  ;;  %v410_v30 = vld [vmem:[%s1773_s2 + $0x58] sm:$0xff]  ;;  %v411_v32 = vld [vmem:[%s1773_s2 + $0x60] sm:$0xff]  ;;  %v412_v33 = vld [vmem:[%s1773_s2 + $0x68] sm:$0xff]  ;;  %s960_s22 = sshll.u32 %s1616_s21, 5 }
  0x21   : > { %v1426_v12 = vld [vmem:[%s1420_s18 + $0x20] sm:$0xff]  ;;  %v1429_v13 = vld [vmem:[%s1420_s18 + $0x28] sm:$0xff]  ;;  %v1432_v14 = vld [vmem:[%s1420_s18 + $0x30] sm:$0xff]  ;;  %v1065_v31 = vpack.c.bf16 %v410_v30, %v409_v29  ;;  %v1069_v34 = vpack.c.bf16 %v412_v33, %v411_v32  ;;  %s1624_s26 = scalar_lea.vmem [#allocation2], %s960_s22 }
  0x22   : > { %v374_v16 = vmul.f32 %v969_v8, %v1426_v12  ;;  %v375_v17 = vmul.f32 %v970_v9, %v1429_v13  ;;  %v1437_v18 = vld [vmem:[%s1420_s18 + $0x38] sm:$0xff]  ;;  %v376_v19 = vmul.f32 %v971_v10, %v1432_v14  ;;  %v413_v35 = vld [vmem:[%s1773_s2 + $0x70] sm:$0xff]  ;;  %v1474_v38 = vld [vmem:[%s1420_s18] sm:$0xff]  ;;  %s819_s28 = sshll.u32 %s1624_s26, 4  ;;  %s1661_s28 = int_to_ptr.vmem [resolvable:$true] %s819_s28 }
  0x23   : > { %v377_v22 = vmul.f32 %v972_v11, %v1437_v18  ;;  %1052 = vmatpush3.bf16.msra.mxu0 %v1049_v5  ;;  %v414_v36 = vld [vmem:[%s1773_s2 + $0x78] sm:$0xff]  ;;  %v361_v39 = vld [vmem:[%s1774_s1] sm:$0xff]  ;;  %v1480_v40 = vld [vmem:[%s1420_s18 + $0x8] sm:$0xff]  ;;  %s1185_s23 = scalar_lea.vmem %s1661_s28, 512 }
  0x24   : > { %v1159_v23 = vpack.i.bf16 %v375_v17, %v374_v16  ;;  %1054 = vmatprep.subr.bf16.mxu0 %v1053_v15  ;;  %v1073_v37 = vpack.c.bf16 %v414_v36, %v413_v35  ;;  %v362_v41 = vld [vmem:[%s1774_s1 + $0x8] sm:$0xff]  ;;  %v370_v42 = vmul.f32 %v361_v39, %v1474_v38  ;;  %v1488_v44 = vld [vmem:[%s1420_s18 + $0x10] sm:$0xff]  ;;  %v1494_v47 = vld [vmem:[%s1420_s18 + $0x18] sm:$0xff]  ;;  %p1186_p11 = scmp.ne.s32.totalorder %s1661_s28, %s1185_s23 }
  0x25   : > { %v1164_v25 = vpack.i.bf16 %v377_v22, %v376_v19  ;;  %v371_v43 = vmul.f32 %v362_v41, %v1480_v40  ;;  %v363_v46 = vld [vmem:[%s1774_s1 + $0x10] sm:$0xff]  ;;  %v364_v48 = vld [vmem:[%s1774_s1 + $0x18] sm:$0xff]  ;;  %v591_v1 = vld [vmem:[%s1759_s4 + $0x28] sm:$0xff] }
  0x26   : > { %1160 = vrot.lane.b32.xlu0 %v1159_v23, %s1281_s27  ;;  %v372_v53 = vmul.f32 %v363_v46, %v1488_v44  ;;  %v373_v54 = vmul.f32 %v364_v48, %v1494_v47  ;;  %v588_v0 = vld [vmem:[%s1759_s4 + $0x10] sm:$0xff]  ;;  %v593_v2 = vld [vmem:[%s1759_s4 + $0x38] sm:$0xff]  ;;  %v590_v5 = vld [vmem:[%s1759_s4 + $0x20] sm:$0xff]  ;;  %p1187_p12 = pnand %p1186_p11, %p1375_p5 }
  0x27   : > { %1056 = vmatpush3.bf16.msra.mxu0 %v1053_v15  ;;  %v1079_v3 = vpack.c.bf16 %v588_v0, %v586_v62  ;;  %v1081_v4 = vpack.c.bf16 %v593_v2, %v591_v1  ;;  %v592_v6 = vld [vmem:[%s1759_s4 + $0x30] sm:$0xff]  ;;  %v595_v7 = vld [vmem:[%s1759_s4 + $0x48] sm:$0xff]  ;;  %v597_v8 = vld [vmem:[%s1759_s4 + $0x58] sm:$0xff] }
  0x28   : > { %1058 = vmatprep.subr.bf16.mxu0 %v1057_v24  ;;  %v1083_v9 = vpack.c.bf16 %v592_v6, %v590_v5  ;;  %v1085_v10 = vpack.c.bf16 %v597_v8, %v595_v7  ;;  %v594_v11 = vld [vmem:[%s1759_s4 + $0x40] sm:$0xff]  ;;  %v596_v15 = vld [vmem:[%s1759_s4 + $0x50] sm:$0xff]  ;;  %v599_v16 = vld [vmem:[%s1759_s4 + $0x68] sm:$0xff]  ;;  %p1188_p13 = pneg %p1187_p12 }
  0x29   : > { %1080 = vmatpush1.bf16.msra.mxu1 %v1079_v3  ;;  %v601_v17 = vld [vmem:[%s1759_s4 + $0x78] sm:$0xff]  ;;  %v1087_v19 = vpack.c.bf16 %v596_v15, %v594_v11  ;;  %v598_v21 = vld [vmem:[%s1759_s4 + $0x60] sm:$0xff]  ;;  %v600_v22 = vld [vmem:[%s1759_s4 + $0x70] sm:$0xff] }
  0x2a   : > { %1165 = vrot.lane.b32.xlu0 %v1164_v25, %s1281_s27  ;;  %1082 = vmatprep.subr.bf16.mxu1 %v1081_v4  ;;  %v1089_v20 = vpack.c.bf16 %v601_v17, %v599_v16  ;;  %v603_v23 = vld [vmem:[%s1759_s4 + $0x88] sm:$0xff]  ;;  %v1091_v25 = vpack.c.bf16 %v600_v22, %v598_v21  ;;  %v602_v27 = vld [vmem:[%s1759_s4 + $0x80] sm:$0xff]  ;;  %v609_v30 = vld [vmem:[%s1759_s4 + $0xb8] sm:$0xff] }
  0x2b   : > { %1060 = vmatpush3.bf16.msra.mxu0 %v1057_v24  ;;  %v605_v24 = vld [vmem:[%s1759_s4 + $0x98] sm:$0xff]  ;;  %v607_v29 = vld [vmem:[%s1759_s4 + $0xa8] sm:$0xff]  ;;  %v606_v33 = vld [vmem:[%s1759_s4 + $0xa0] sm:$0xff] }
  0x2c   : > { %1062 = vmatprep.subr.bf16.mxu0 %v1061_v28  ;;  %v1093_v26 = vpack.c.bf16 %v605_v24, %v603_v23  ;;  %v1097_v32 = vpack.c.bf16 %v609_v30, %v607_v29  ;;  %v611_v35 = vld [vmem:[%s1759_s4 + $0xc8] sm:$0xff]  ;;  %v613_v36 = vld [vmem:[%s1759_s4 + $0xd8] sm:$0xff]  ;;  %v610_v41 = vld [vmem:[%s1759_s4 + $0xc0] sm:$0xff] }
  0x2d   : > { %1084 = vmatpush1.bf16.msra.mxu1 %v1083_v9  ;;  %v1101_v39 = vpack.c.bf16 %v613_v36, %v611_v35 }
  0x2e   : > { %1086 = vmatprep.subr.bf16.mxu1 %v1085_v10 }
  0x2f   : > { %1064 = vmatpush3.bf16.msra.mxu0 %v1061_v28  ;;  %v604_v28 = vld [vmem:[%s1759_s4 + $0x90] sm:$0xff] }
  0x30   : > { %1066 = vmatprep.subr.bf16.mxu0 %v1065_v31 }
  0x31   : > { %1088 = vmatpush1.bf16.msra.mxu1 %v1087_v19 }
  0x32   : > { %1090 = vmatprep.subr.bf16.mxu1 %v1089_v20  ;;  %v1282_v20 = vmov 0.0  }
  0x33   : > { %1068 = vmatpush3.bf16.msra.mxu0 %v1065_v31  ;;  %v1095_v31 = vpack.c.bf16 %v604_v28, %v602_v27  ;;  %682 = vmatprep.mubr.f32.mxu1 %v1282_v20 }
  0x34   : > { %1070 = vmatprep.subr.bf16.mxu0 %v1069_v34 }
  0x35   : > { %1092 = vmatpush1.bf16.msra.mxu1 %v1091_v25 }
  0x36   : > { %1094 = vmatprep.subr.bf16.mxu1 %v1093_v26 }
  0x37   : > { %1072 = vmatpush3.bf16.msra.mxu0 %v1069_v34  ;;  %v608_v34 = vld [vmem:[%s1759_s4 + $0xb0] sm:$0xff] }
  0x38   : > { %1074 = vmatprep.subr.bf16.mxu0 %v1073_v37 }
  0x39   : > { %1096 = vmatpush1.bf16.msra.mxu1 %v1095_v31 }
  0x3a   : > { %1098 = vmatprep.subr.bf16.mxu1 %v1097_v32 }
  0x3b   : > { %1076 = vmatpush3.bf16.msra.mxu0 %v1073_v37  ;;  %v1099_v37 = vpack.c.bf16 %v608_v34, %v606_v33 }
  0x3d   : > { %1100 = vmatpush1.bf16.msra.mxu1 %v1099_v37 }
  0x3e   : > { %1102 = vmatprep.subr.bf16.mxu1 %v1101_v39  ;;  %v974_v39 = vld [vmem:[%s1761_s6] ss:$0 sm:$0xff] }
  0x98   : > { %v1161_v45 = vpop.permute.xlu0 %1160 }
  0x99   : > { %v1163_v49 = vunpack.i.h.bf16 %v1161_v45  ;;  %v1162_v50 = vunpack.i.l.bf16 %v1161_v45  ;;  %v617_v45 = vld [vmem:[%s1759_s4 + $0xf8] sm:$0xff] }
  0x9b   : > { %v395_v51 = vsel %vm394_vm0, %v370_v42, %v1162_v50  ;;  %v396_v52 = vsel %vm394_vm0, %v371_v43, %v1163_v49  ;;  %v612_v42 = vld [vmem:[%s1759_s4 + $0xd0] sm:$0xff]  ;;  %v615_v43 = vld [vmem:[%s1759_s4 + $0xe8] sm:$0xff]  ;;  %v614_v49 = vld [vmem:[%s1759_s4 + $0xe0] sm:$0xff] }
  0x9c   : > { %v1166_v55 = vpop.permute.xlu0 %1165  ;;  %1039 = vmatprep.mubr.f32.mxu0 %v395_v51  ;;  %v1103_v46 = vpack.c.bf16 %v612_v42, %v610_v41  ;;  %v1105_v48 = vpack.c.bf16 %v617_v45, %v615_v43  ;;  %v616_v50 = vld [vmem:[%s1759_s4 + $0xf0] sm:$0xff] }
  0x9d   : > { %v1168_v56 = vunpack.i.h.bf16 %v1166_v55  ;;  %v1167_v57 = vunpack.i.l.bf16 %v1166_v55  ;;  %1040 = vmatmul.mubr.f32.vlgmr.msra.gmra.mrb[0].mxu0 %v396_v52  ;;  %v1107_v51 = vpack.c.bf16 %v616_v50, %v614_v49  ;;  %v973_v52 = vld [vmem:[%s1776_s3] ss:$0 sm:$0xff] }
  0x9e   : > { %1104 = vmatpush1.bf16.msra.mxu1 %v1103_v46 }
  0x9f   : > { %v397_v58 = vsel %vm394_vm0, %v372_v53, %v1167_v57  ;;  %v398_v59 = vsel %vm394_vm0, %v373_v54, %v1168_v56  ;;  %1106 = vmatprep.subr.bf16.mxu1 %v1105_v48 }
  0xa0   : > { %1042 = vmatprep.mubr.f32.mxu0 %v397_v58 }
  0xa1   : > { %1043 = vmatmul.mubr.f32.gmra.mrb[2].mxu0 %v398_v59 }
  0xa2   : > { %1108 = vmatpush1.bf16.msra.mxu1 %v1107_v51 }
 0x170   : > { %v1041_v53 = vpop.f32.mrb[0].mxu0 }
 0x171   : > { %v494_v54 = vadd.f32 %v1041_v53, %v973_v52  ;;  %v488_v55 = vpop.f32.mrb[1].mxu0 }
 0x172   : > { %v489_v56 = vadd.f32 %v973_v52, %v488_v55 }
 0x173   : > { %v528_v57 = vmul.f32 -0.5, %v494_v54  ;;  %v508_v58 = vmul.f32 0.70710677, %v494_v54 }
 0x174   : > { %v527_v59 = vmul.f32 -0.5, %v489_v56  ;;  %v1044_v60 = vpop.f32.mrb[2].mxu0  ;;  %v507_v61 = vmul.f32 0.70710677, %v489_v56 }
 0x175   : > { %v532_v62 = vmul.f32 %v528_v57, %v494_v54  ;;  %v504_v63 = vadd.f32 %v1044_v60, %v973_v52  ;;  %v498_v0 = vpop.f32.mrb[3].mxu0  ;;  %1169 = verf.f32 %v508_v58 }
 0x176   : > { %v531_v1 = vmul.f32 %v527_v59, %v489_v56  ;;  %v499_v2 = vadd.f32 %v973_v52, %v498_v0  ;;  %1171 = verf.f32 %v507_v61 }
 0x177   : > { %v537_v3 = vmul.f32 1.442695, %v532_v62  ;;  %v530_v4 = vmul.f32 -0.5, %v504_v63  ;;  %v510_v5 = vmul.f32 0.70710677, %v504_v63 }
 0x178   : > { %v535_v6 = vmul.f32 1.442695, %v531_v1  ;;  %v529_v7 = vmul.f32 -0.5, %v499_v2  ;;  %v509_v8 = vmul.f32 0.70710677, %v499_v2 }
 0x179   : > { %1173 = vpow2.f32 %v537_v3  ;;  %v534_v9 = vmul.f32 %v530_v4, %v504_v63  ;;  %v975_v3 = vld [vmem:[%s1760_s5] ss:$0 sm:$0xff] }
 0x17a   : > { %1175 = vpow2.f32 %v535_v6  ;;  %v533_v10 = vmul.f32 %v529_v7, %v499_v2 }
 0x17b   : > { %v541_v11 = vmul.f32 1.442695, %v534_v9  ;;  %1177 = verf.f32 %v509_v8 }
 0x17c   : > { %v539_v15 = vmul.f32 1.442695, %v533_v10  ;;  %1179 = verf.f32 %v510_v5 }
 0x17d   : > { %1181 = vpow2.f32 %v541_v11 }
 0x17e   : > { %1183 = vpow2.f32 %v539_v15 }
 0x17f   : > { %v1170_v16 = vpop.eup %1169 }
 0x180   : > { %v1172_v17 = vpop.eup %1171  ;;  %v516_v19 = vadd.f32 1.0, %v1170_v16 }
 0x181   : > { %v515_v21 = vadd.f32 1.0, %v1172_v17 }
 0x182   : > { %v520_v22 = vmul.f32 0.5, %v516_v19 }
 0x183   : > { %v1174_v23 = vpop.eup %1173  ;;  %v519_v24 = vmul.f32 0.5, %v515_v21 }
 0x184   : > { %v1176_v25 = vpop.eup %1175  ;;  %v544_v26 = vmul.f32 %v1174_v23, %v494_v54  ;;  %v524_v27 = vmul.f32 %v520_v22, %v494_v54 }
 0x185   : > { %v1178_v28 = vpop.eup %1177  ;;  %v543_v29 = vmul.f32 %v1176_v25, %v489_v56  ;;  %v523_v30 = vmul.f32 %v519_v24, %v489_v56 }
 0x186   : > { %v1180_v31 = vpop.eup %1179  ;;  %v517_v32 = vadd.f32 1.0, %v1178_v28  ;;  %v548_v33 = vmul.f32 0.3989423, %v544_v26 }
 0x187   : > { %v1182_v34 = vpop.eup %1181  ;;  %v547_v35 = vmul.f32 0.3989423, %v543_v29  ;;  %v518_v36 = vadd.f32 1.0, %v1180_v31 }
 0x188   : > { %v1184_v37 = vpop.eup %1183  ;;  %v521_v41 = vmul.f32 0.5, %v517_v32  ;;  %v546_v42 = vmul.f32 %v1182_v34, %v504_v63  ;;  %v552_v48 = vadd.f32 %v548_v33, %v520_v22 }
 0x189   : > { %v551_v43 = vadd.f32 %v547_v35, %v519_v24  ;;  %v545_v45 = vmul.f32 %v1184_v37, %v499_v2  ;;  %v522_v46 = vmul.f32 0.5, %v518_v36 }
 0x18a   : > { %v525_v49 = vmul.f32 %v521_v41, %v499_v2  ;;  %v550_v52 = vmul.f32 0.3989423, %v546_v42  ;;  %v563_v56 = vmul.f32 %v974_v39, %v552_v48 }
 0x18b   : > { %v562_v50 = vmul.f32 %v974_v39, %v551_v43  ;;  %v549_v51 = vmul.f32 0.3989423, %v545_v45  ;;  %v526_v53 = vmul.f32 %v522_v46, %v504_v63 }
 0x18c   : > { %v554_v57 = vadd.f32 %v550_v52, %v522_v46 }
 0x18d   : > { %570 = vrot.lane.b32.xlu1 %v562_v50, %s1281_s27  ;;  %v553_v54 = vadd.f32 %v549_v51, %v521_v41 }
 0x18e   : > { %v565_v58 = vmul.f32 %v974_v39, %v554_v57 }
 0x18f   : > { %v564_v55 = vmul.f32 %v974_v39, %v553_v54 }
 0x191   : > { %574 = vrot.lane.b32.xlu0 %v564_v55, %s1281_s27  ;;  %572 = vrot.lane.b32.xlu1 %v563_v56, %s1281_s27 }
 0x195   : > { %576 = vrot.lane.b32.xlu1 %v565_v58, %s1281_s27 }
 0x1ff   : > { %v571_v59 = vpop.permute.xlu1 %570 }
 0x200   : > { %v582_v60 = vsel %vm394_vm0, %v523_v30, %v571_v59 }
 0x201   : > { %683 = vmatmul.mubr.f32.vlgmr.msra.gmra.mrb[0].mxu1 %v582_v60 }
 0x202   : > { %688 = vmatprep.mubr.f32.mxu1 %v1282_v20 }
 0x203   : > { %v573_v61 = vpop.permute.xlu1 %572  ;;  %v575_v63 = vpop.permute.xlu0 %574 }
 0x204   : > { %v583_v62 = vsel %vm394_vm0, %v524_v27, %v573_v61  ;;  %v584_v0 = vsel %vm394_vm0, %v525_v49, %v575_v63 }
 0x205   : > { %689 = vmatmul.mubr.f32.gmra.mrb[2].mxu1 %v583_v62 }
 0x206   : > { %694 = vmatprep.mubr.f32.mxu1 %v1282_v20 }
 0x207   : > { %v577_v1 = vpop.permute.xlu1 %576 }
 0x208   : > { %v585_v2 = vsel %vm394_vm0, %v526_v53, %v577_v1 }
 0x209   : > { %695 = vmatmul.mubr.f32.gmra.mrb[4].mxu1 %v584_v0 }
 0x20a   : > { %700 = vmatprep.mubr.f32.mxu1 %v1282_v20 }
 0x20d   : > { %701 = vmatmul.mubr.f32.gmra.mrb[6].mxu1 %v585_v2 }
 0x2d4   : > { %v684_v4 = vpop.f32.mrb[0].mxu1 }
 0x2d5   : > { %v714_v5 = vadd.f32 %v975_v3, %v684_v4  ;;  %v686_v6 = vpop.f32.mrb[1].mxu1 }
 0x2d6   : > { %v718_v7 = vadd.f32 1.0, %v686_v6 }
 0x2d7   : > { %772 = vst.msk [vmem:[%s1624_s26] sm:$0xff] %vm394_vm0, %v714_v5 }
 0x2d8   : > { %730 = vrot.lane.b32.xlu0 %v718_v7, %s1281_s27  ;;  %v690_v8 = vpop.f32.mrb[2].mxu1  ;;  %v722_v25 = vmul.f32 %v718_v7, %v1474_v38 }
 0x2d9   : > { %v715_v9 = vadd.f32 %v975_v3, %v690_v8  ;;  %v692_v10 = vpop.f32.mrb[3].mxu1 }
 0x2da   : > { %v719_v11 = vadd.f32 1.0, %v692_v10 }
 0x2db   : > { %773 = vst.msk [vmem:[%s1624_s26 + $0x8] sm:$0xff] %vm394_vm0, %v715_v9 }
 0x2dc   : > { %732 = vrot.lane.b32.xlu1 %v719_v11, %s1281_s27  ;;  %v696_v15 = vpop.f32.mrb[4].mxu1  ;;  %v723_v29 = vmul.f32 %v719_v11, %v1480_v40 }
 0x2dd   : > { %v716_v16 = vadd.f32 %v975_v3, %v696_v15  ;;  %v698_v17 = vpop.f32.mrb[5].mxu1 }
 0x2de   : > { %v720_v19 = vadd.f32 1.0, %v698_v17 }
 0x2df   : > { %774 = vst.msk [vmem:[%s1624_s26 + $0x10] sm:$0xff] %vm394_vm0, %v716_v16 }
 0x2e0   : > { %734 = vrot.lane.b32.xlu0 %v720_v19, %s1281_s27  ;;  %v702_v20 = vpop.f32.mrb[6].mxu1  ;;  %v724_v34 = vmul.f32 %v720_v19, %v1488_v44 }
 0x2e1   : > { %v717_v21 = vadd.f32 %v975_v3, %v702_v20  ;;  %v704_v22 = vpop.f32.mrb[7].mxu1 }
 0x2e2   : > { %v721_v23 = vadd.f32 1.0, %v704_v22 }
 0x2e3   : > { %775 = vst.msk [vmem:[%s1624_s26 + $0x18] sm:$0xff] %vm394_vm0, %v717_v21  ;;  %s1189_s26 = sshll.u32 %s1283_s24, 4  ;;  %s1190_s26 = int_to_ptr.vmem [resolvable:$false] %s1189_s26 }
 0x2e4   : > { %736 = vrot.lane.b32.xlu1 %v721_v23, %s1281_s27  ;;  %v725_v40 = vmul.f32 %v721_v23, %v1494_v47  ;;  %p1192_p0 = scmp.lt.s32.totalorder %s1661_s28, %s1190_s26 }
 0x2e8   : > { %780 = vrot.lane.b32.xlu1 %v714_v5, %s1281_s27 }
 0x2ec   : > { %782 = vrot.lane.b32.xlu1 %v715_v9, %s1281_s27 }
 0x2f0   : > { %784 = vrot.lane.b32.xlu1 %v716_v16, %s1281_s27 }
 0x2f4   : > { %786 = vrot.lane.b32.xlu1 %v717_v21, %s1281_s27  ;;  %s336_s27 = scalar_lea.vmem [#allocation4], %s960_s22 }
 0x2f5   : > { %s835_s29 = sshll.u32 %s336_s27, 4  ;;  %s1663_s29 = int_to_ptr.vmem [resolvable:$true] %s835_s29 }
 0x34a   : > { %v731_v24 = vpop.permute.xlu0 %730 }
 0x34b   : > { %v742_v26 = vmul.f32 %v1426_v12, %v731_v24 }
 0x34d   : > { %v746_v27 = vadd.f32 %v742_v26, %v722_v25 }
 0x34e   : > { %v733_v28 = vpop.permute.xlu1 %732 }
 0x34f   : > { %v743_v30 = vmul.f32 %v1429_v13, %v733_v28  ;;  %v750_v31 = vand.u32 2147483647, %v746_v27 }
 0x351   : > { %v747_v32 = vadd.f32 %v743_v30, %v723_v29  ;;  %v754_v37 = vsel %vm394_vm0, %v750_v31, 0.0 }
 0x352   : > { %v735_v33 = vpop.permute.xlu0 %734 }
 0x353   : > { %v751_v35 = vand.u32 2147483647, %v747_v32  ;;  %v744_v36 = vmul.f32 %v1432_v14, %v735_v33 }
 0x355   : > { %v755_v38 = vsel %vm394_vm0, %v751_v35, 0.0  ;;  %v748_v12 = vadd.f32 %v744_v36, %v724_v34 }
 0x356   : > { %v737_v39 = vpop.permute.xlu1 %736  ;;  %v756_v41 = vadd.f32 %v755_v38, %v754_v37 }
 0x357   : > { %v752_v42 = vand.u32 2147483647, %v748_v12  ;;  %v745_v13 = vmul.f32 %v1437_v18, %v737_v39 }
 0x359   : > { %v749_v43 = vadd.f32 %v745_v13, %v725_v40  ;;  %v757_v44 = vsel %vm394_vm0, %v752_v42, 0.0 }
 0x35a   : > { %v781_v45 = vpop.permute.xlu1 %780  ;;  %v758_v46 = vadd.f32 %v757_v44, %v756_v41 }
 0x35b   : > { %v753_v48 = vand.u32 2147483647, %v749_v43  ;;  %792 = vst.msk [vmem:[%s336_s27] sm:$0xff] %vm394_vm0, %v781_v45 }
 0x35d   : > { %v759_v14 = vsel %vm394_vm0, %v753_v48, 0.0 }
 0x35e   : > { %v783_v47 = vpop.permute.xlu1 %782  ;;  %v760_v49 = vadd.f32 %v759_v14, %v758_v46 }
 0x35f   : > { %793 = vst.msk [vmem:[%s336_s27 + $0x8] sm:$0xff] %vm394_vm0, %v783_v47 }
 0x360   : > { %761 = vadd.xlane.f32.xlu0 %v760_v49 }
 0x362   : > { %v785_v18 = vpop.permute.xlu1 %784 }
 0x363   : > { %794 = vst.msk [vmem:[%s336_s27 + $0x10] sm:$0xff] %vm394_vm0, %v785_v18 }
 0x366   : > { %v787_v50 = vpop.permute.xlu1 %786 }
 0x367   : > { %795 = vst.msk [vmem:[%s336_s27 + $0x18] sm:$0xff] %vm394_vm0, %v787_v50  ;;  %s1191_s27 = scalar_lea.vmem %s1190_s26, 1024 }
 0x368   : > { %p1193_p1 = scmp.lt.s32.totalorder %s1191_s27, %s1185_s23 }
 0x36a   : > { %p1194_p2 = por %p1193_p1, %p1192_p0 }
 0x36c   : > { %p1195_p3 = pnand %p1194_p2, %p1188_p13 }
 0x36e   : > { %1198 = shalt.err (!%p1195_p3)
}
 0x36f   : > { %s1199_s16 = scalar_lea.hbm %s1671_s17, 512  ;;  %s1203_s24 = scalar_lea.hbm %s1762_s7, 1024 }
 0x370   : > { %p1200_p4 = scmp.ne.s32.totalorder %s1671_s17, %s1199_s16  ;;  %p1204_p9 = scmp.lt.u32.totalorder %s1671_s17, %s1762_s7 }
 0x371   : > { %p1205_p10 = scmp.lt.u32.totalorder %s1203_s24, %s1199_s16  ;;  %p1207_p12 = scmp.lt.u32.totalorder %s1199_s16, %s1671_s17 }
 0x372   : > { %p1201_p7 = pnand %p1200_p4, %p1375_p5 }
 0x373   : > { %p1206_p11 = por %p1205_p10, %p1204_p9 }
 0x374   : > { %p1202_p8 = pneg %p1201_p7 }
 0x375   : > { %p1208_p13 = por %p1207_p12, %p1206_p11 }
 0x377   : > { %p1209_p0 = pnand %p1208_p13, %p1202_p8 }
 0x379   : > { %1212 = shalt.err (!%p1209_p0)
}
 0x37a   : > { %s1284_s23 = smov 128   ;;  %s1285_s14 = smov 8  }
 0x37b   : > { %s1777_s22 = scalar_lea.sflag [#allocation3], %s1616_s21  ;;  %s1778_s27 = sshll.u32 %s1358_s13, 9 }
 0x37c   : > { %1111 = dma.vmem_to_hbm [thread:$0]  (%p1375_p5), %s1661_s28, 512, %s1671_s17, %s1777_s22, %s1284_s23, %s1284_s23, %s1285_s14  }
 0x37d   : > { %s1705_s24 = scalar_lea.hbm %s1763_s8, %s1778_s27  ;;  %s802_s26 = scalar_lea.sflag [#allocation5], %s1616_s21 }
 0x37e   : > { %s1213_s0 = scalar_lea.vmem %s1663_s29, 512  ;;  %s1286_s1 = smov [#allocation4]  }
 0x37f   : > { %p1214_p1 = scmp.ne.s32.totalorder %s1663_s29, %s1213_s0  ;;  %s1217_s2 = sshll.u32 %s1286_s1, 4  ;;  %s1218_s2 = int_to_ptr.vmem [resolvable:$false] %s1217_s2 }
 0x380   : > { %s1219_s3 = scalar_lea.vmem %s1218_s2, 1024  ;;  %p1220_p4 = scmp.lt.s32.totalorder %s1663_s29, %s1218_s2 }
 0x381   : > { %p1215_p2 = pnand %p1214_p1, %p1375_p5  ;;  %p1221_p7 = scmp.lt.s32.totalorder %s1219_s3, %s1213_s0 }
 0x383   : > { %p1216_p3 = pneg %p1215_p2  ;;  %p1222_p8 = por %p1221_p7, %p1220_p4 }
 0x385   : > { %p1223_p9 = pnand %p1222_p8, %p1216_p3 }
 0x387   : > { %1226 = shalt.err (!%p1223_p9)
}
 0x388   : > { %s1227_s13 = scalar_lea.hbm %s1705_s24, 512  ;;  %s1231_s1 = scalar_lea.hbm %s1763_s8, 1024 }
 0x389   : > { %p1228_p10 = scmp.ne.s32.totalorder %s1705_s24, %s1227_s13  ;;  %p1232_p13 = scmp.lt.u32.totalorder %s1705_s24, %s1763_s8 }
 0x38a   : > { %p1233_p0 = scmp.lt.u32.totalorder %s1231_s1, %s1227_s13  ;;  %p1235_p2 = scmp.lt.u32.totalorder %s1227_s13, %s1705_s24 }
 0x38b   : > { %p1229_p11 = pnand %p1228_p10, %p1375_p5 }
 0x38c   : > { %p1234_p1 = por %p1233_p0, %p1232_p13 }
 0x38d   : > { %p1230_p12 = pneg %p1229_p11 }
 0x38e   : > { %p1236_p3 = por %p1235_p2, %p1234_p1 }
 0x390   : > { %p1237_p4 = pnand %p1236_p3, %p1230_p12 }
 0x392   : > { %1240 = shalt.err (!%p1237_p4)
}
 0x393   : > { %1112 = dma.vmem_to_hbm [thread:$0]  (%p1375_p5), %s1663_s29, 512, %s1705_s24, %s802_s26, %s1284_s23, %s1284_s23, %s1285_s14  }
 0x394   : > { %s964_s0 = sshll.u32 %s1393_s25, 3 }
 0x395   : > { %s351_s27 = scalar_lea.vmem %s1764_s9, %s964_s0 }
 0x3ed   : > { %v762_v51 = vpop.xlane.xlu0 %761 }
 0x3ee   : > { %v763_v52 = vrot.slane %v762_v51, 4 }
 0x3f0   : > { %v764_v53 = vadd.f32 %v763_v52, %v762_v51 }
 0x3f2   : > { %v765_v54 = vrot.slane %v764_v53, 2 }
 0x3f4   : > { %v766_v55 = vadd.f32 %v765_v54, %v764_v53 }
 0x3f6   : > { %v767_v56 = vrot.slane %v766_v55, 1 }
 0x3f8   : > { %v768_v57 = vadd.f32 %v767_v56, %v766_v55 }
 0x3fa   : > { %1109 = vpush %v768_v57 }
 0x42b   : > { %s1110_s16 = spop %1109 }
 0x42c   : > { %v770_v58 = vstv %s1110_s16 }
 0x42d   : > { %771 = vst [vmem:[%s351_s27] sm:$0xff] %v770_v58 }
 0x42e PF: > { %p1122_p5 = scmp.ge.s32.totalorder %s1279_s12, 2  ;;  %s853_s21 = sand.u32 1, %s1267_s30  }
 0x42f   : > { %s854_s29 = scalar_lea.sflag [#allocation3], %s853_s21 }
 0x430   : > { %p1116_p7 = pnand %p1122_p5, %p1379_p6 }
 0x432   : > { %1258 = dma.done.wait (!%p1116_p7), %s854_s29, 512  }
 0x433   : > { %1260 = vsyncadd (!%p1116_p7), %s854_s29, 4294966784  ;;  %s863_s23 = scalar_lea.sflag [#allocation5], %s853_s21 }
 0x434   : > { %1262 = dma.done.wait (!%p1116_p7), %s863_s23, 512  }
 0x435   : > { %1264 = vsyncadd (!%p1116_p7), %s863_s23, 4294966784  ;;  %s1779_s25 = sld [smem:[#allocation8_spill]]  ;;  %p23_p8 = scmp.ge.s32.totalorder %s1362_s15, 4  }
 0x436   : > { %s1780_s30 = smov %s1271_s10  ;;  %s1781_s10 = smov %s1275_s11 }
 0x437   : > { %s1783_s12 = smov %s1362_s15  ;;  %25 = sbr.rel (!%p23_p8) target bundleno = 10 (0xa), region = 114 }
 0x43b   : > { %s1782_s11 = smov %s1779_s25 }
 0x43e   :  { %875 = vsyncpa [#allocation3], 1 }
 0x43f   :  { %877 = vsyncpa [#allocation3 + $0x1], 1 }
 0x440   :  { %878 = vsyncpa [#allocation5], 1 }
 0x441   :  { %880 = vsyncpa [#allocation5 + $0x1], 1 }

</bundles_post_ra>
